<compile_context>
chip_gen: v7x
topology: tpu7x:2x2x1
jax: 0.10.0
libtpu: 0.0.40
codegen_flags: <defaults>
</compile_context>

<pallas_src>
import functools
import math

import jax
import jax.numpy as jnp
from jax import lax
from jax.experimental import pallas as pl
from jax.experimental.pallas import tpu as pltpu


# ----------------------------------------------------------------------------
# Parameter / buffer setup (mirrors PositionalEncoding.__init__)
# ----------------------------------------------------------------------------
def make_positional_encoding_table(max_len, d_model, dtype=jnp.float32):
    """pe buffer, shape (max_len, 1, d_model) — identical math to the torch code."""
    position = jnp.arange(max_len, dtype=jnp.float32)[:, None]                 # (L, 1)
    div_term = jnp.exp(
        jnp.arange(0, d_model, 2, dtype=jnp.float32) * (-math.log(10000.0) / d_model)
    )                                                                           # (D/2,)
    pe = jnp.zeros((max_len, d_model), dtype=jnp.float32)
    pe = pe.at[:, 0::2].set(jnp.sin(position * div_term))
    pe = pe.at[:, 1::2].set(jnp.cos(position * div_term))
    return pe[:, None, :].astype(dtype)                                         # (L, 1, D)


# ----------------------------------------------------------------------------
# Kernels  (blocks: x/out (ts, B, D), pe (ts, 1, D))
# ----------------------------------------------------------------------------
def _pe_add_kernel(x_ref, pe_ref, o_ref):
    # eval-mode forward: x + pe[:S]   (nn.Dropout is identity in eval mode)
    # pe block has a size-1 batch axis; the broadcast add happens in-register.
    o_ref[...] = (x_ref[...] + pe_ref[...]).astype(o_ref.dtype)


def _hash_keep_mask(shape, tile_rows, seed_u32, threshold31):
    """Bernoulli keep-mask with P(keep)=1-rate from a murmur3-style finalizer of
    the global element index.  Pure 32-bit VPU integer ops: runs on every TPU
    generation and in interpret mode; per-element deterministic given the seed."""
    ts, b, d = shape
    row = lax.broadcasted_iota(jnp.int32, shape, 0) + pl.program_id(0) * tile_rows
    bi = lax.broadcasted_iota(jnp.int32, shape, 1)
    di = lax.broadcasted_iota(jnp.int32, shape, 2)
    idx = (row * b + bi) * d + di                       # global element index (wraps ok)
    h = idx.astype(jnp.uint32) ^ (seed_u32 * jnp.uint32(0x9E3779B9))
    h = h ^ (h >> 16)
    h = h * jnp.uint32(0x85EBCA6B)
    h = h ^ (h >> 13)
    h = h * jnp.uint32(0xC2B2AE35)
    h = h ^ (h >> 16)
    # Use the low 31 bits so the final compare is a plain signed int32 compare.
    h31 = (h & jnp.uint32(0x7FFFFFFF)).astype(jnp.int32)
    return h31 >= jnp.int32(threshold31)                # P(keep) = 1 - rate (2^-31 bias)


def _pe_add_dropout_kernel(seed_ref, x_ref, pe_ref, o_ref, *, tile_rows, threshold31, scale):
    # training-mode forward: inverted dropout(x + pe[:S])
    y = x_ref[...] + pe_ref[...]
    seed_u32 = seed_ref[0].astype(jnp.uint32)
    keep = _hash_keep_mask(y.shape, tile_rows, seed_u32, threshold31)
    o_ref[...] = jnp.where(keep, y * scale, 0.0).astype(o_ref.dtype)


# ----------------------------------------------------------------------------
# Wrapper
# ----------------------------------------------------------------------------
def _round_up(a, m):
    return (a + m - 1) // m * m


def _vmem_capacity_bytes():
    try:
        if jax.default_backend() == "tpu":
            return int(pltpu.get_tpu_info().vmem_capacity_bytes)
    except Exception:
        pass
    return 64 * 1024 * 1024  # conservative default (v7x per-TC VMEM)


def _pick_tile_rows(seq_len, batch, d_model, itemsize, vmem_cap):
    """Sequence-tile rows sized from the *padded* per-row VMEM footprint."""
    sublane = {4: 8, 2: 16, 1: 32}.get(itemsize, 8)
    # one (1, B, D) row in VMEM after (sublane, lane) tiling/padding
    row_bytes = _round_up(batch, sublane) * _round_up(d_model, 128) * itemsize
    # perf feedback: ~6 MiB blocks on v7x (64 MiB VMEM), ~8 MiB on v5e/v6e.
    target = 6 * 1024 * 1024 if vmem_cap <= 64 * 1024 * 1024 else 8 * 1024 * 1024
    # keep double-buffered (x + out) + pe comfortably inside ~70% of VMEM.
    budget = max(row_bytes, (vmem_cap * 7 // 10) // 5)
    block_bytes = min(target, budget)
    rows = max(1, block_bytes // row_bytes)
    rows = min(rows, seq_len)
    if rows > 8:
        rows -= rows % 8
    return rows, row_bytes, sublane


def positional_encoding_forward(x, pe, *, dropout_rate=0.1, training=False, seed=0,
                                donate_x=False):
    """Forward of PositionalEncoding.

    x:  (S, B, D)
    pe: (max_len, 1, D)   (full table is passed; only (ts, 1, D) tiles are DMA'd)
    """
    S, B, D = x.shape
    dtype = x.dtype
    pe = pe.astype(dtype)                      # no pe[:S] copy in HBM

    itemsize = jnp.dtype(dtype).itemsize
    vmem_cap = _vmem_capacity_bytes()
    ts, row_bytes, sublane = _pick_tile_rows(S, B, D, itemsize, vmem_cap)
    grid = (pl.cdiv(S, ts),)

    # Last two block dims equal the full array dims -> always a legal tiling.
    # For d_model a multiple of 128 (typical transformer sizes) stores are
    # fully lane-dense; smaller D degrades to masked stores (tiny shapes only).
    x_spec = pl.BlockSpec((ts, B, D), lambda i: (i, 0, 0))
    pe_spec = pl.BlockSpec((ts, 1, D), lambda i: (i, 0, 0))

    pe_row_bytes = sublane * _round_up(D, 128) * itemsize
    footprint = 2 * 2 * ts * row_bytes + 2 * ts * pe_row_bytes + (2 << 20)
    vmem_limit = min(int(vmem_cap * 0.85), max(32 * 1024 * 1024, footprint))

    cparams = pltpu.CompilerParams(
        dimension_semantics=("parallel",),     # independent seq tiles; megacore-shardable
        vmem_limit_bytes=vmem_limit,
    )
    out_shape = jax.ShapeDtypeStruct((S, B, D), dtype)

    if (not training) or dropout_rate <= 0.0:
        return pl.pallas_call(
            _pe_add_kernel,
            out_shape=out_shape,
            grid=grid,
            in_specs=[x_spec, pe_spec],
            out_specs=x_spec,
            compiler_params=cparams,
            input_output_aliases=({0: 0} if donate_x else {}),
        )(x, pe)

    rate = float(dropout_rate)
    if rate >= 1.0:                            # degenerate nn.Dropout(p=1.0)
        return jnp.zeros_like(x)

    threshold31 = min(int(round(rate * 2.0 ** 31)), 2 ** 31 - 1)
    scale = 1.0 / (1.0 - rate)
    seed_arr = jnp.asarray([seed], dtype=jnp.int32)
    return pl.pallas_call(
        functools.partial(_pe_add_dropout_kernel,
                          tile_rows=ts, threshold31=threshold31, scale=scale),
        out_shape=out_shape,
        grid=grid,
        in_specs=[
            pl.BlockSpec(memory_space=pltpu.MemorySpace.SMEM),   # seed scalar
            x_spec,
            pe_spec,
        ],
        out_specs=x_spec,
        compiler_params=cparams,
        input_output_aliases=({1: 0} if donate_x else {}),
    )(seed_arr, x, pe)


# ----------------------------------------------------------------------------
# Demo / self-check
# ----------------------------------------------------------------------------
if __name__ == "__main__":
    SEQ, BATCH, D_MODEL, MAX_LEN = 8, 2, 32, 64
    DROP = 0.1

    key = jax.random.PRNGKey(0)
    x = jax.random.normal(key, (SEQ, BATCH, D_MODEL), dtype=jnp.float32)
    pe = make_positional_encoding_table(MAX_LEN, D_MODEL)        # (64, 1, 32)

    # --- eval-mode forward (dropout == identity), deterministic -------------
    out = positional_encoding_forward(x, pe, dropout_rate=DROP, training=False)
    out = jax.block_until_ready(out)
    ref = x + pe[:SEQ, :]
    assert out.shape == (SEQ, BATCH, D_MODEL)
    assert jnp.allclose(out, ref, atol=1e-6, rtol=1e-6), "eval mismatch vs reference"

    # --- training-mode forward (in-kernel hash-RNG dropout) -----------------
    out_tr = positional_encoding_forward(
        x, pe, dropout_rate=DROP, training=True, seed=1234
    )
    out_tr = jax.block_until_ready(out_tr)
    assert out_tr.shape == (SEQ, BATCH, D_MODEL)
    assert bool(jnp.all(jnp.isfinite(out_tr)))
    # kept elements must equal ref / (1 - p); dropped elements are exactly zero
    kept = out_tr != 0.0
    assert jnp.allclose(
        jnp.where(kept, out_tr * (1.0 - DROP), 0.0),
        jnp.where(kept, ref, 0.0),
        atol=1e-5,
        rtol=1e-5,
    ), "training-mode kept values do not match scaled reference"
    drop_frac = float(1.0 - jnp.mean(kept.astype(jnp.float32)))
    assert 0.0 < drop_frac < 0.35, f"implausible drop fraction {drop_frac}"

    print("KERNEL_OK")
</pallas_src>

<mosaic_0001>
module attributes {stable_mosaic.version = 11 : i64} {
  func.func @_pe_add_kernel(%arg0: i32, %arg1: memref<8x2x32xf32, #tpu.memory_space<vmem>>, %arg2: memref<8x1x32xf32, #tpu.memory_space<vmem>>, %arg3: memref<8x2x32xf32, #tpu.memory_space<vmem>>) attributes {dimension_semantics = [#tpu.dimension_semantics<parallel>], iteration_bounds = array<i64: 1>, scalar_prefetch = 0 : i64, scratch_operands = 0 : i64, tpu.core_type = #tpu.core_type<tc>, window_params = [{transform_indices = @transform_0, window_bounds = array<i64: 8, 2, 32>}, {transform_indices = @transform_1, window_bounds = array<i64: 8, 1, 32>}, {transform_indices = @transform_2, window_bounds = array<i64: 8, 2, 32>}]} {
    %c0 = arith.constant 0 : index
    %c0_0 = arith.constant 0 : index
    %c0_1 = arith.constant 0 : index
    %0 = vector.load %arg1[%c0, %c0_0, %c0_1] : memref<8x2x32xf32, #tpu.memory_space<vmem>>, vector<8x2x32xf32>
    %c0_2 = arith.constant 0 : index
    %c0_3 = arith.constant 0 : index
    %c0_4 = arith.constant 0 : index
    %1 = vector.load %arg2[%c0_2, %c0_3, %c0_4] : memref<8x1x32xf32, #tpu.memory_space<vmem>>, vector<8x1x32xf32>
    %2 = vector.broadcast %1 : vector<8x1x32xf32> to vector<8x2x32xf32>
    %3 = arith.addf %0, %2 : vector<8x2x32xf32>
    %c0_5 = arith.constant 0 : index
    %c0_6 = arith.constant 0 : index
    %c0_7 = arith.constant 0 : index
    %4 = vector.load %arg3[%c0_5, %c0_6, %c0_7] : memref<8x2x32xf32, #tpu.memory_space<vmem>>, vector<8x2x32xf32>
    tpu.vector_store %arg3[%c0_5, %c0_6, %c0_7], %3 {strides = array<i32>} : memref<8x2x32xf32, #tpu.memory_space<vmem>>, vector<8x2x32xf32>,
    return
  }
  func.func @transform_0(%arg0: i32) -> (i32, i32, i32) {
    %c0_i32 = arith.constant 0 : i32
    %c0_i32_0 = arith.constant 0 : i32
    %c0_i32_1 = arith.constant 0 : i32
    return %arg0, %c0_i32, %c0_i32_0 : i32, i32, i32
  }
  func.func @transform_1(%arg0: i32) -> (i32, i32, i32) {
    %c0_i32 = arith.constant 0 : i32
    %c0_i32_0 = arith.constant 0 : i32
    %c0_i32_1 = arith.constant 0 : i32
    return %arg0, %c0_i32, %c0_i32_0 : i32, i32, i32
  }
  func.func @transform_2(%arg0: i32) -> (i32, i32, i32) {
    %c0_i32 = arith.constant 0 : i32
    %c0_i32_0 = arith.constant 0 : i32
    %c0_i32_1 = arith.constant 0 : i32
    return %arg0, %c0_i32, %c0_i32_0 : i32, i32, i32
  }
}

</mosaic_0001>

<bundles_post_ra>
// kernel: tpu_custom_call.1
= control target key start
LH: loop header
LB: loop body
LE: loop exit
PB: predicated region body
PF: predicated region fallthrough
CT: control target
= control target key end

     0   :  { %vm84_vm0 = vcmask 254976   ;;  %s230_s0 = inlined_call_operand.vmem [shape: f32[8,2,32], index: 0, kind: input, shape index: {}]   ;;  %s231_s1 = inlined_call_operand.vmem [shape: f32[64,1,32], index: 1, kind: input, shape index: {}]   ;;  %s232_s2 = inlined_call_operand.hbm [shape: f32[8,2,32], index: 2, kind: output, shape index: {}]  }
   0x1   :  { %v12_v0 = vld [vmem:[%s230_s0] sm:$0x3]  ;;  %v13_v3 = vld [vmem:[%s230_s0 + $0x2] sm:$0x3]  ;;  %v14_v5 = vld [vmem:[%s230_s0 + $0x4] sm:$0x3] }
   0x2   :  { %v109_v1 = vld [vmem:[%s231_s1] ss:$0 sm:$0xff]  ;;  %v110_v4 = vld [vmem:[%s231_s1 + $0x1] ss:$0 sm:$0xff]  ;;  %v111_v7 = vld [vmem:[%s231_s1 + $0x2] ss:$0 sm:$0xff] }
   0x3   :  { %v76_v2 = vadd.f32 %v109_v1, %v12_v0  ;;  %v77_v6 = vadd.f32 %v110_v4, %v13_v3  ;;  %v15_v8 = vld [vmem:[%s230_s0 + $0x6] sm:$0x3]  ;;  %v112_v9 = vld [vmem:[%s231_s1 + $0x3] ss:$0 sm:$0xff]  ;;  %v78_v10 = vadd.f32 %v111_v7, %v14_v5  ;;  %v16_v12 = vld [vmem:[%s230_s0 + $0x8] sm:$0x3] }
   0x4   :  { %v79_v11 = vadd.f32 %v112_v9, %v15_v8  ;;  %v113_v13 = vld [vmem:[%s231_s1 + $0x4] ss:$0 sm:$0xff]  ;;  %v17_v14 = vld [vmem:[%s230_s0 + $0xa] sm:$0x3]  ;;  %v114_v16 = vld [vmem:[%s231_s1 + $0x5] ss:$0 sm:$0xff] }
   0x5   :  { %85 = vst.msk [vmem:[#allocation2] sm:$0x3] %vm84_vm0, %v76_v2  ;;  %86 = vst.msk [vmem:[#allocation2 + $0x2] sm:$0x3] %vm84_vm0, %v77_v6  ;;  %v80_v15 = vadd.f32 %v113_v13, %v16_v12  ;;  %v18_v17 = vld [vmem:[%s230_s0 + $0xc] sm:$0x3]  ;;  %v81_v19 = vadd.f32 %v114_v16, %v17_v14 }
   0x6   :  { %v115_v18 = vld [vmem:[%s231_s1 + $0x6] ss:$0 sm:$0xff]  ;;  %87 = vst.msk [vmem:[#allocation2 + $0x4] sm:$0x3] %vm84_vm0, %v78_v10  ;;  %88 = vst.msk [vmem:[#allocation2 + $0x6] sm:$0x3] %vm84_vm0, %v79_v11 }
   0x7   :  { %v82_v20 = vadd.f32 %v115_v18, %v18_v17  ;;  %v19_v21 = vld [vmem:[%s230_s0 + $0xe] sm:$0x3]  ;;  %v116_v22 = vld [vmem:[%s231_s1 + $0x7] ss:$0 sm:$0xff] }
   0x8   :  { %7 = vsyncpa [#allocation3], 0  ;;  %89 = vst.msk [vmem:[#allocation2 + $0x8] sm:$0x3] %vm84_vm0, %v80_v15  ;;  %v83_v23 = vadd.f32 %v116_v22, %v19_v21  ;;  %s144_s13 = smov [#allocation2]  }
   0x9   :  { %s98_s14 = sshll.u32 %s144_s13, 4  ;;  %90 = vst.msk [vmem:[#allocation2 + $0xa] sm:$0x3] %vm84_vm0, %v81_v19  ;;  %91 = vst.msk [vmem:[#allocation2 + $0xc] sm:$0x3] %vm84_vm0, %v82_v20  ;;  %s99_s14 = int_to_ptr.vmem [resolvable:$true] %s98_s14 }
   0xa   :  { %92 = vst.msk [vmem:[#allocation2 + $0xe] sm:$0x3] %vm84_vm0, %v83_v23  ;;  %s120_s15 = scalar_lea.vmem %s99_s14, 256  ;;  %p125_p1 = scmp.lt.s32.totalorder %s99_s14, %s99_s14 }
   0xb   :  { %p121_p0 = scmp.ne.s32.totalorder %s99_s14, %s120_s15  ;;  %p126_p2 = scmp.lt.s32.totalorder %s120_s15, %s120_s15 }
   0xd   :  { %p127_p3 = por %p126_p2, %p125_p1 }
   0xf   :  { %p128_p4 = pnand %p127_p3, %p121_p0 }
  0x11   :  { %131 = shalt.err (!%p128_p4)
}
  0x12   :  { %s132_s16 = scalar_lea.hbm %s232_s2, 256 }
  0x13   :  { %p133_p5 = scmp.ne.s32.totalorder %s232_s2, %s132_s16  ;;  %p136_p6 = scmp.lt.u32.totalorder %s132_s16, %s232_s2 }
  0x15   :  { %p138_p7 = pnand %p136_p6, %p133_p5 }
  0x17   :  { %141 = shalt.err (!%p138_p7)
}
  0x18   :  { %s145_s21 = smov 32   ;;  %s146_s22 = smov 2  }
  0x19   :  { %104 = dma.vmem_to_hbm [thread:$0]  %s99_s14, 256, %s232_s2, [#allocation3], %s145_s21, %s145_s21, %s146_s22  }
  0x1a   :  { %142 = dma.done.wait [#allocation3], 256  }
  0x1b   :  { %143 = vsyncadd [#allocation3], 4294967040 }
  0x1c   :  { %108 = vsyncpa [#allocation3], 1 }

</bundles_post_ra>
